<compile_context>
chip_gen: v5e
topology: v5e:2x2
jax: 0.10.0
libtpu: 0.0.40
codegen_flags: <defaults>
</compile_context>

<pallas_src>
import inspect

import jax
import jax.numpy as jnp
from jax.experimental import pallas as pl
from jax.experimental.pallas import tpu as pltpu


# ---------------------------------------------------------------------------
# Small helpers (feature detection / tiling heuristics).
# ---------------------------------------------------------------------------
def _supports_buffered():
    try:
        return hasattr(pl, "Buffered") and (
            "pipeline_mode" in inspect.signature(pl.BlockSpec).parameters)
    except Exception:
        return False


_HAS_BUFFERED = _supports_buffered()


def _const_spec(block_shape, index_map):
    """BlockSpec for a grid-invariant operand: single-buffered if supported."""
    if _HAS_BUFFERED:
        return pl.BlockSpec(block_shape, index_map, pipeline_mode=pl.Buffered(1))
    return pl.BlockSpec(block_shape, index_map)


def _tpu_vmem_capacity():
    try:
        cap = int(getattr(pltpu.get_tpu_info(), "vmem_capacity_bytes", 0))
        if cap > 0:
            return cap
    except Exception:
        pass
    return 64 * 1024 * 1024          # conservative (v7x-sized) fallback


def _pick_batch_block(batch, max_block):
    """Largest divisor of `batch` <= max_block, preferring an even grid so a
    v7x megacore can shard the parallel axis evenly (no effect on v5e/v6e)."""
    max_block = max(1, int(max_block))
    divs = [d for d in range(1, batch + 1) if batch % d == 0 and d <= max_block]
    even = [d for d in divs if (batch // d) % 2 == 0]
    return max(even) if even else max(divs)


# ---------------------------------------------------------------------------
# Pass 1: spectral branch + pointwise conv + per-block BN partial statistics.
# ---------------------------------------------------------------------------
def _pass1_kernel(x_ref, wc_ref, w1_ref, w2_ref, f_ref, cb_ref,
                  s_ref, st_ref, xf_s, ys_s):
    Bb, Cin, L = x_ref.shape
    Cout = wc_ref.shape[0]
    Mp2 = f_ref.shape[1]
    Mp = Mp2 // 2

    xb = x_ref[...]                                      # (Bb, Cin, L) bf16

    # ---- linear branch: Conv1d(kernel_size=1, bias=False) as ONE batched
    #      MXU contraction (no per-sample loop, no concatenate copy).
    wc_b = jnp.broadcast_to(wc_ref[...], (Bb, Cout, Cin))
    x2 = jnp.einsum("boi,bil->bol", wc_b, xb,
                    preferred_element_type=jnp.float32)  # (Bb, Cout, L) f32

    # ---- forward truncated real DFT: one fused [Re | Im] MXU matmul,
    #      parked in VMEM scratch so the mix below reads bounded slices.
    xf_s[...] = jnp.dot(xb.reshape(Bb * Cin, L), f_ref[...],
                        preferred_element_type=jnp.float32
                        ).reshape(Bb, Cin, Mp2)

    # ---- per-mode complex channel mixing, accumulated per input channel
    #      into a VMEM scratch; the lane rotation supplies the cross terms.
    #      left half : yr = sum_i Re_i*wr_i - Im_i*wi_i
    #      right half: yi = sum_i Re_i*wi_i + Im_i*wr_i
    #      (Accumulating through the ref bounds live ranges; for very large
    #      Cin this loop could become a lax.fori_loop over the scratch.)
    for i in range(Cin):
        xfi = xf_s[:, i:i + 1, :]                        # (Bb, 1, Mp2) = [Re|Im]
        xgi = pltpu.roll(xfi, shift=Mp, axis=2)          # [Im|Re]
        upd = xfi * w1_ref[i][None] + xgi * w2_ref[i][None]   # f32 accumulate
        if i == 0:
            ys_s[...] = upd
        else:
            ys_s[...] += upd

    # ---- inverse real DFT of the zero-padded spectrum (per-mode 1/L, 2/L
    #      scales are already folded into w1/w2 in f32): one fused MXU matmul.
    x1 = jnp.dot(ys_s[...].reshape(Bb * Cout, Mp2).astype(jnp.bfloat16),
                 cb_ref[...],
                 preferred_element_type=jnp.float32).reshape(Bb, Cout, L)

    s = x1 + x2                                          # (Bb, Cout, L) f32

    # ---- per-block BatchNorm partial statistics from the f32 value,
    #      stored as one lane-dense (1, 2, Cout) block.
    ssum = jnp.sum(jnp.sum(s, axis=2), axis=0, keepdims=True)      # (1, Cout)
    ssq = jnp.sum(jnp.sum(s * s, axis=2), axis=0, keepdims=True)   # (1, Cout)
    st_ref[...] = jnp.concatenate([ssum, ssq], axis=0)[None]

    # ---- s is written once / re-read once (both HBM-bound) -> store bf16.
    s_ref[...] = s.astype(s_ref.dtype)


# ---------------------------------------------------------------------------
# Pass 2: fused BatchNorm apply (precomputed per-channel scale/shift) + ReLU.
# ---------------------------------------------------------------------------
def _pass2_kernel(s_ref, ab_ref, o_ref):
    s = s_ref[...].astype(jnp.float32)                   # (Bb2, Cout, L)
    a = ab_ref[0][None]                                  # (1, Cout, 1) scale
    b = ab_ref[1][None]                                  # (1, Cout, 1) shift
    o_ref[...] = jnp.maximum(s * a + b, 0.0)


# ---------------------------------------------------------------------------
# Wrapper.
# ---------------------------------------------------------------------------
def spectral_block1d(x, conv_w, spec_wr, spec_wi, bn_gamma, bn_beta, modes):
    """Forward pass of SpectralBlock1d (training-mode BatchNorm), NCL layout."""
    B, Cin, L = x.shape
    Cout = conv_w.shape[0]
    assert modes <= L // 2 + 1, "modes must not exceed L//2 + 1"

    # Pad the mode axis so the fused [Re|Im] frequency axis is a multiple of
    # 128 lanes (unmasked MXU stores).
    Mp = 64 * (-(-modes // 64))
    Mp2 = 2 * Mp

    # ---- DFT bases: O(1) cos/sin only, bf16 (angle from (l*m) mod L to avoid
    #      large-argument precision loss).  Built once in plain XLA.
    l_idx = jnp.arange(L, dtype=jnp.int32)[:, None]
    m_idx = jnp.arange(Mp, dtype=jnp.int32)[None, :]
    ang = (2.0 * jnp.pi / L) * ((l_idx * m_idx) % L).astype(jnp.float32)  # (L, Mp)
    active = (m_idx < modes).astype(jnp.float32)
    fwd_basis = jnp.concatenate(
        [jnp.cos(ang) * active, -jnp.sin(ang) * active], axis=1
    ).astype(jnp.bfloat16)                                                # (L, 2Mp)
    inv_basis = jnp.concatenate(
        [jnp.cos(ang.T), -jnp.sin(ang.T)], axis=0
    ).astype(jnp.bfloat16)                                                # (2Mp, L)

    # Per-mode irfft scale (DC / Nyquist counted once), folded into the f32
    # spectral weights *before* the bf16 cast (bf16 basis stays O(1)).
    mm = jnp.arange(Mp)
    special = (mm == 0)
    if L % 2 == 0:
        special = special | (mm == L // 2)
    cm = jnp.where(mm < modes, jnp.where(special, 1.0, 2.0), 0.0) / L     # (Mp,)

    pad = ((0, 0), (0, 0), (0, Mp - modes))
    wr_p = jnp.pad(spec_wr.astype(jnp.float32), pad) * cm
    wi_p = jnp.pad(spec_wi.astype(jnp.float32), pad) * cm
    w1 = jnp.concatenate([wr_p, wr_p], axis=-1).astype(jnp.bfloat16)      # (Cin,Cout,2Mp)
    w2 = jnp.concatenate([-wi_p, wi_p], axis=-1).astype(jnp.bfloat16)     # (Cin,Cout,2Mp)
    wc16 = conv_w.astype(jnp.bfloat16)                                    # (Cout, Cin)
    x16 = x.astype(jnp.bfloat16)                                          # bf16 DMA path

    # ---- generation-aware VMEM budget and batch tiling.
    cap = _tpu_vmem_capacity()
    vmem_limit = int(min(96 << 20, (cap * 3) // 4))   # ~48 MiB v7x, 96 MiB v5e/v6e
    gen_cap1 = 16 if cap >= (128 << 20) else 8

    const1 = (2 * Cin * Cout * Mp2 + 2 * L * Mp2 + Cout * Cin) * 2        # bf16 consts
    per_b1 = (2 * Cin * L * 2 + 2 * Cout * L * 2 + 3 * Cout * L * 4
              + (Cin + Cout) * Mp2 * 4)
    fit1 = max(1, (vmem_limit - const1 - (4 << 20)) // per_b1)
    Bb1 = _pick_batch_block(B, min(gen_cap1, fit1))
    nb1 = B // Bb1

    per_b2 = 2 * Cout * L * 2 + 2 * Cout * L * 4      # s bf16 + out f32, dbl-buffered
    fit2 = max(1, (vmem_limit - (4 << 20)) // per_b2)
    Bb2 = _pick_batch_block(B, min(4 * gen_cap1, fit2))
    nb2 = B // Bb2

    cparams = pltpu.CompilerParams(
        dimension_semantics=("parallel",),
        vmem_limit_bytes=vmem_limit,
    )

    # ---------------- pass 1: s = spectral(x) + conv1x1(x), partial BN stats.
    s, stats = pl.pallas_call(
        _pass1_kernel,
        grid=(nb1,),
        in_specs=[
            pl.BlockSpec((Bb1, Cin, L), lambda b: (b, 0, 0)),
            _const_spec((Cout, Cin), lambda b: (0, 0)),
            _const_spec((Cin, Cout, Mp2), lambda b: (0, 0, 0)),
            _const_spec((Cin, Cout, Mp2), lambda b: (0, 0, 0)),
            _const_spec((L, Mp2), lambda b: (0, 0)),
            _const_spec((Mp2, L), lambda b: (0, 0)),
        ],
        out_specs=[
            pl.BlockSpec((Bb1, Cout, L), lambda b: (b, 0, 0)),
            pl.BlockSpec((1, 2, Cout), lambda b: (b, 0, 0)),
        ],
        out_shape=[
            jax.ShapeDtypeStruct((B, Cout, L), jnp.bfloat16),
            jax.ShapeDtypeStruct((nb1, 2, Cout), jnp.float32),
        ],
        scratch_shapes=[
            pltpu.VMEM((Bb1, Cin, Mp2), jnp.float32),     # forward DFT [Re|Im]
            pltpu.VMEM((Bb1, Cout, Mp2), jnp.float32),    # mixed spectrum
        ],
        compiler_params=cparams,
    )(x16, wc16, w1, w2, fwd_basis, inv_basis)

    # ---------------- tiny cross-block reduction + BN scale/shift (O(Cout)).
    # NOTE: E[x^2] - mean^2 in f32, clamped at 0 (standard training-mode BN).
    tot = jnp.sum(stats, axis=0)                          # (2, Cout)
    n = jnp.float32(B * L)
    mean = tot[0] / n
    var = jnp.maximum(tot[1] / n - mean * mean, 0.0)      # biased (training) var
    a = bn_gamma.astype(jnp.float32) * jax.lax.rsqrt(var + 1e-5)
    shift = bn_beta.astype(jnp.float32) - mean * a
    ab = jnp.stack([a, shift], axis=0)[:, :, None]        # (2, Cout, 1)

    # ---------------- pass 2: y = relu(s * a + b); pure streaming, own tiling.
    out = pl.pallas_call(
        _pass2_kernel,
        grid=(nb2,),
        in_specs=[
            pl.BlockSpec((Bb2, Cout, L), lambda b: (b, 0, 0)),
            _const_spec((2, Cout, 1), lambda b: (0, 0, 0)),
        ],
        out_specs=pl.BlockSpec((Bb2, Cout, L), lambda b: (b, 0, 0)),
        out_shape=jax.ShapeDtypeStruct((B, Cout, L), jnp.float32),
        compiler_params=cparams,
    )(s, ab)
    return out


# ---------------------------------------------------------------------------
# Pure-JAX reference mirroring the PyTorch forward (training-mode BN).
# ---------------------------------------------------------------------------
def reference(x, conv_w, spec_wr, spec_wi, bn_gamma, bn_beta, modes):
    B, Cin, L = x.shape
    Cout = conv_w.shape[0]
    x_ft = jnp.fft.rfft(x, axis=-1)
    w = spec_wr + 1j * spec_wi
    mixed = jnp.einsum('bix,iox->box', x_ft[:, :, :modes], w)
    out_ft = jnp.zeros((B, Cout, L // 2 + 1), dtype=jnp.complex64)
    out_ft = out_ft.at[:, :, :modes].set(mixed)
    x1 = jnp.fft.irfft(out_ft, n=L, axis=-1)
    x2 = jnp.einsum('oi,bil->bol', conv_w, x, precision='highest')
    s = x1 + x2
    mean = jnp.mean(s, axis=(0, 2), keepdims=True)
    var = jnp.mean((s - mean) ** 2, axis=(0, 2), keepdims=True)
    y = (s - mean) / jnp.sqrt(var + 1e-5) * bn_gamma.reshape(1, -1, 1) \
        + bn_beta.reshape(1, -1, 1)
    return jnp.maximum(y, 0.0)


if __name__ == "__main__":
    B, Cin, Cout, L, modes = 2, 4, 8, 16, 5

    key = jax.random.PRNGKey(0)
    kx, kc, kwr, kwi = jax.random.split(key, 4)

    x = jax.random.normal(kx, (B, Cin, L), dtype=jnp.float32)

    # Conv1d weight (out, in, kernel=1) -> squeezed to (out, in)
    bound = 1.0 / (Cin ** 0.5)
    conv_w = jax.random.uniform(kc, (Cout, Cin), jnp.float32, -bound, bound)

    # SpectralConv1d complex weights: scale * rand(in, out, modes)
    scale = 1.0 / (Cin * Cout)
    spec_wr = scale * jax.random.uniform(kwr, (Cin, Cout, modes), jnp.float32)
    spec_wi = scale * jax.random.uniform(kwi, (Cin, Cout, modes), jnp.float32)

    # BatchNorm1d affine params at their PyTorch defaults
    bn_gamma = jnp.ones((Cout,), jnp.float32)
    bn_beta = jnp.zeros((Cout,), jnp.float32)

    out = spectral_block1d(x, conv_w, spec_wr, spec_wi, bn_gamma, bn_beta, modes)
    out = jax.block_until_ready(out)

    ref = reference(x, conv_w, spec_wr, spec_wi, bn_gamma, bn_beta, modes)
    err = float(jnp.max(jnp.abs(out - ref)))
    assert out.shape == (B, Cout, L)
    assert jnp.allclose(out, ref, atol=5e-2, rtol=5e-2), f"max abs err {err}"

    print("KERNEL_OK")
</pallas_src>

<mosaic_0001>
module attributes {stable_mosaic.version = 11 : i64} {
  func.func @_pass1_kernel(%arg0: i32, %arg1: memref<1x4x16xbf16, #tpu.memory_space<vmem>>, %arg2: memref<8x4xbf16, #tpu.memory_space<vmem>>, %arg3: memref<4x8x128xbf16, #tpu.memory_space<vmem>>, %arg4: memref<4x8x128xbf16, #tpu.memory_space<vmem>>, %arg5: memref<16x128xbf16, #tpu.memory_space<vmem>>, %arg6: memref<128x16xbf16, #tpu.memory_space<vmem>>, %arg7: memref<1x8x16xbf16, #tpu.memory_space<vmem>>, %arg8: memref<1x2x8xf32, #tpu.memory_space<vmem>>, %arg9: memref<1x4x128xf32, #tpu.memory_space<vmem>>, %arg10: memref<1x8x128xf32, #tpu.memory_space<vmem>>) attributes {dimension_semantics = [#tpu.dimension_semantics<parallel>], iteration_bounds = array<i64: 2>, scalar_prefetch = 0 : i64, scratch_operands = 2 : i64, tpu.core_type = #tpu.core_type<tc>, window_params = [{transform_indices = @transform_0, window_bounds = array<i64: 1, 4, 16>}, {pipeline_mode = #tpu.pipeline_mode<synchronous>, transform_indices = @transform_1, window_bounds = array<i64: 8, 4>}, {pipeline_mode = #tpu.pipeline_mode<synchronous>, transform_indices = @transform_2, window_bounds = array<i64: 4, 8, 128>}, {pipeline_mode = #tpu.pipeline_mode<synchronous>, transform_indices = @transform_3, window_bounds = array<i64: 4, 8, 128>}, {pipeline_mode = #tpu.pipeline_mode<synchronous>, transform_indices = @transform_4, window_bounds = array<i64: 16, 128>}, {pipeline_mode = #tpu.pipeline_mode<synchronous>, transform_indices = @transform_5, window_bounds = array<i64: 128, 16>}, {transform_indices = @transform_6, window_bounds = array<i64: 1, 8, 16>}, {transform_indices = @transform_7, window_bounds = array<i64: 1, 2, 8>}]} {
    %c0 = arith.constant 0 : index
    %c0_0 = arith.constant 0 : index
    %c0_1 = arith.constant 0 : index
    %0 = vector.load %arg1[%c0, %c0_0, %c0_1] : memref<1x4x16xbf16, #tpu.memory_space<vmem>>, vector<1x4x16xbf16>
    %c0_2 = arith.constant 0 : index
    %c0_3 = arith.constant 0 : index
    %1 = vector.load %arg2[%c0_2, %c0_3] : memref<8x4xbf16, #tpu.memory_space<vmem>>, vector<8x4xbf16>
    %2 = vector.shape_cast %1 : vector<8x4xbf16> to vector<1x8x4xbf16>
    "tpu.trace_start"() <{level = 10 : i32, message = "boi,bil->bol"}> : () -> ()
    %cst = arith.constant dense<0.000000e+00> : vector<1x8x16xf32>
    %3 = tpu.matmul %2, %0, %cst {dimension_numbers = #tpu.dot_dimension_numbers<[2], [1], [1], [2], [0, 0, 0, 1, 1, 2], [0], [0]>} : vector<1x8x4xbf16>, vector<1x4x16xbf16>, vector<1x8x16xf32> -> vector<1x8x16xf32>
    "tpu.trace_stop"() : () -> ()
    %4 = vector.shape_cast %0 : vector<1x4x16xbf16> to vector<4x16xbf16>
    %c0_4 = arith.constant 0 : index
    %c0_5 = arith.constant 0 : index
    %5 = vector.load %arg5[%c0_4, %c0_5] : memref<16x128xbf16, #tpu.memory_space<vmem>>, vector<16x128xbf16>
    %cst_6 = arith.constant dense<0.000000e+00> : vector<4x128xf32>
    %6 = tpu.matmul %4, %5, %cst_6 {dimension_numbers = #tpu.dot_dimension_numbers<[1], [0], [0], [1], [0, 0, 1, 1], [], []>} : vector<4x16xbf16>, vector<16x128xbf16>, vector<4x128xf32> -> vector<4x128xf32>
    %7 = vector.shape_cast %6 : vector<4x128xf32> to vector<1x4x128xf32>
    %c0_7 = arith.constant 0 : index
    %c0_8 = arith.constant 0 : index
    %c0_9 = arith.constant 0 : index
    %8 = vector.load %arg9[%c0_7, %c0_8, %c0_9] : memref<1x4x128xf32, #tpu.memory_space<vmem>>, vector<1x4x128xf32>
    tpu.vector_store %arg9[%c0_7, %c0_8, %c0_9], %7 {strides = array<i32>} : memref<1x4x128xf32, #tpu.memory_space<vmem>>, vector<1x4x128xf32>,
    %c0_10 = arith.constant 0 : index
    %c0_11 = arith.constant 0 : index
    %c0_12 = arith.constant 0 : index
    %9 = vector.load %arg9[%c0_10, %c0_11, %c0_12] : memref<1x4x128xf32, #tpu.memory_space<vmem>>, vector<1x1x128xf32>
    %c64_i32 = arith.constant 64 : i32
    %10 = tpu.dynamic_rotate %9 by %c64_i32 dim 2 : vector<1x1x128xf32>, i32 -> vector<1x1x128xf32>
    %c0_13 = arith.constant 0 : index
    %c0_14 = arith.constant 0 : index
    %c0_15 = arith.constant 0 : index
    %11 = vector.load %arg3[%c0_13, %c0_14, %c0_15] : memref<4x8x128xbf16, #tpu.memory_space<vmem>>, vector<1x8x128xbf16>
    %12 = vector.shape_cast %11 : vector<1x8x128xbf16> to vector<8x128xbf16>
    %13 = vector.shape_cast %12 : vector<8x128xbf16> to vector<1x8x128xbf16>
    %14 = arith.extf %13 : vector<1x8x128xbf16> to vector<1x8x128xf32>
    %15 = vector.broadcast %9 : vector<1x1x128xf32> to vector<1x8x128xf32>
    %16 = arith.mulf %15, %14 : vector<1x8x128xf32>
    %c0_16 = arith.constant 0 : index
    %c0_17 = arith.constant 0 : index
    %c0_18 = arith.constant 0 : index
    %17 = vector.load %arg4[%c0_16, %c0_17, %c0_18] : memref<4x8x128xbf16, #tpu.memory_space<vmem>>, vector<1x8x128xbf16>
    %18 = vector.shape_cast %17 : vector<1x8x128xbf16> to vector<8x128xbf16>
    %19 = vector.shape_cast %18 : vector<8x128xbf16> to vector<1x8x128xbf16>
    %20 = arith.extf %19 : vector<1x8x128xbf16> to vector<1x8x128xf32>
    %21 = vector.broadcast %10 : vector<1x1x128xf32> to vector<1x8x128xf32>
    %22 = arith.mulf %21, %20 : vector<1x8x128xf32>
    %23 = arith.addf %16, %22 : vector<1x8x128xf32>
    %c0_19 = arith.constant 0 : index
    %c0_20 = arith.constant 0 : index
    %c0_21 = arith.constant 0 : index
    %24 = vector.load %arg10[%c0_19, %c0_20, %c0_21] : memref<1x8x128xf32, #tpu.memory_space<vmem>>, vector<1x8x128xf32>
    tpu.vector_store %arg10[%c0_19, %c0_20, %c0_21], %23 {strides = array<i32>} : memref<1x8x128xf32, #tpu.memory_space<vmem>>, vector<1x8x128xf32>,
    %c0_22 = arith.constant 0 : index
    %c1 = arith.constant 1 : index
    %c0_23 = arith.constant 0 : index
    %25 = vector.load %arg9[%c0_22, %c1, %c0_23] : memref<1x4x128xf32, #tpu.memory_space<vmem>>, vector<1x1x128xf32>
    %c64_i32_24 = arith.constant 64 : i32
    %26 = tpu.dynamic_rotate %25 by %c64_i32_24 dim 2 : vector<1x1x128xf32>, i32 -> vector<1x1x128xf32>
    %c1_25 = arith.constant 1 : index
    %c0_26 = arith.constant 0 : index
    %c0_27 = arith.constant 0 : index
    %27 = vector.load %arg3[%c1_25, %c0_26, %c0_27] : memref<4x8x128xbf16, #tpu.memory_space<vmem>>, vector<1x8x128xbf16>
    %28 = vector.shape_cast %27 : vector<1x8x128xbf16> to vector<8x128xbf16>
    %29 = vector.shape_cast %28 : vector<8x128xbf16> to vector<1x8x128xbf16>
    %30 = arith.extf %29 : vector<1x8x128xbf16> to vector<1x8x128xf32>
    %31 = vector.broadcast %25 : vector<1x1x128xf32> to vector<1x8x128xf32>
    %32 = arith.mulf %31, %30 : vector<1x8x128xf32>
    %c1_28 = arith.constant 1 : index
    %c0_29 = arith.constant 0 : index
    %c0_30 = arith.constant 0 : index
    %33 = vector.load %arg4[%c1_28, %c0_29, %c0_30] : memref<4x8x128xbf16, #tpu.memory_space<vmem>>, vector<1x8x128xbf16>
    %34 = vector.shape_cast %33 : vector<1x8x128xbf16> to vector<8x128xbf16>
    %35 = vector.shape_cast %34 : vector<8x128xbf16> to vector<1x8x128xbf16>
    %36 = arith.extf %35 : vector<1x8x128xbf16> to vector<1x8x128xf32>
    %37 = vector.broadcast %26 : vector<1x1x128xf32> to vector<1x8x128xf32>
    %38 = arith.mulf %37, %36 : vector<1x8x128xf32>
    %39 = arith.addf %32, %38 : vector<1x8x128xf32>
    %c0_31 = arith.constant 0 : index
    %c0_32 = arith.constant 0 : index
    %c0_33 = arith.constant 0 : index
    %40 = vector.load %arg10[%c0_31, %c0_32, %c0_33] : memref<1x8x128xf32, #tpu.memory_space<vmem>>, vector<1x8x128xf32>
    %41 = arith.addf %40, %39 : vector<1x8x128xf32>
    %c0_34 = arith.constant 0 : index
    %c0_35 = arith.constant 0 : index
    %c0_36 = arith.constant 0 : index
    %42 = vector.load %arg10[%c0_34, %c0_35, %c0_36] : memref<1x8x128xf32, #tpu.memory_space<vmem>>, vector<1x8x128xf32>
    tpu.vector_store %arg10[%c0_34, %c0_35, %c0_36], %41 {strides = array<i32>} : memref<1x8x128xf32, #tpu.memory_space<vmem>>, vector<1x8x128xf32>,
    %c0_37 = arith.constant 0 : index
    %c2 = arith.constant 2 : index
    %c0_38 = arith.constant 0 : index
    %43 = vector.load %arg9[%c0_37, %c2, %c0_38] : memref<1x4x128xf32, #tpu.memory_space<vmem>>, vector<1x1x128xf32>
    %c64_i32_39 = arith.constant 64 : i32
    %44 = tpu.dynamic_rotate %43 by %c64_i32_39 dim 2 : vector<1x1x128xf32>, i32 -> vector<1x1x128xf32>
    %c2_40 = arith.constant 2 : index
    %c0_41 = arith.constant 0 : index
    %c0_42 = arith.constant 0 : index
    %45 = vector.load %arg3[%c2_40, %c0_41, %c0_42] : memref<4x8x128xbf16, #tpu.memory_space<vmem>>, vector<1x8x128xbf16>
    %46 = vector.shape_cast %45 : vector<1x8x128xbf16> to vector<8x128xbf16>
    %47 = vector.shape_cast %46 : vector<8x128xbf16> to vector<1x8x128xbf16>
    %48 = arith.extf %47 : vector<1x8x128xbf16> to vector<1x8x128xf32>
    %49 = vector.broadcast %43 : vector<1x1x128xf32> to vector<1x8x128xf32>
    %50 = arith.mulf %49, %48 : vector<1x8x128xf32>
    %c2_43 = arith.constant 2 : index
    %c0_44 = arith.constant 0 : index
    %c0_45 = arith.constant 0 : index
    %51 = vector.load %arg4[%c2_43, %c0_44, %c0_45] : memref<4x8x128xbf16, #tpu.memory_space<vmem>>, vector<1x8x128xbf16>
    %52 = vector.shape_cast %51 : vector<1x8x128xbf16> to vector<8x128xbf16>
    %53 = vector.shape_cast %52 : vector<8x128xbf16> to vector<1x8x128xbf16>
    %54 = arith.extf %53 : vector<1x8x128xbf16> to vector<1x8x128xf32>
    %55 = vector.broadcast %44 : vector<1x1x128xf32> to vector<1x8x128xf32>
    %56 = arith.mulf %55, %54 : vector<1x8x128xf32>
    %57 = arith.addf %50, %56 : vector<1x8x128xf32>
    %c0_46 = arith.constant 0 : index
    %c0_47 = arith.constant 0 : index
    %c0_48 = arith.constant 0 : index
    %58 = vector.load %arg10[%c0_46, %c0_47, %c0_48] : memref<1x8x128xf32, #tpu.memory_space<vmem>>, vector<1x8x128xf32>
    %59 = arith.addf %58, %57 : vector<1x8x128xf32>
    %c0_49 = arith.constant 0 : index
    %c0_50 = arith.constant 0 : index
    %c0_51 = arith.constant 0 : index
    %60 = vector.load %arg10[%c0_49, %c0_50, %c0_51] : memref<1x8x128xf32, #tpu.memory_space<vmem>>, vector<1x8x128xf32>
    tpu.vector_store %arg10[%c0_49, %c0_50, %c0_51], %59 {strides = array<i32>} : memref<1x8x128xf32, #tpu.memory_space<vmem>>, vector<1x8x128xf32>,
    %c0_52 = arith.constant 0 : index
    %c3 = arith.constant 3 : index
    %c0_53 = arith.constant 0 : index
    %61 = vector.load %arg9[%c0_52, %c3, %c0_53] : memref<1x4x128xf32, #tpu.memory_space<vmem>>, vector<1x1x128xf32>
    %c64_i32_54 = arith.constant 64 : i32
    %62 = tpu.dynamic_rotate %61 by %c64_i32_54 dim 2 : vector<1x1x128xf32>, i32 -> vector<1x1x128xf32>
    %c3_55 = arith.constant 3 : index
    %c0_56 = arith.constant 0 : index
    %c0_57 = arith.constant 0 : index
    %63 = vector.load %arg3[%c3_55, %c0_56, %c0_57] : memref<4x8x128xbf16, #tpu.memory_space<vmem>>, vector<1x8x128xbf16>
    %64 = vector.shape_cast %63 : vector<1x8x128xbf16> to vector<8x128xbf16>
    %65 = vector.shape_cast %64 : vector<8x128xbf16> to vector<1x8x128xbf16>
    %66 = arith.extf %65 : vector<1x8x128xbf16> to vector<1x8x128xf32>
    %67 = vector.broadcast %61 : vector<1x1x128xf32> to vector<1x8x128xf32>
    %68 = arith.mulf %67, %66 : vector<1x8x128xf32>
    %c3_58 = arith.constant 3 : index
    %c0_59 = arith.constant 0 : index
    %c0_60 = arith.constant 0 : index
    %69 = vector.load %arg4[%c3_58, %c0_59, %c0_60] : memref<4x8x128xbf16, #tpu.memory_space<vmem>>, vector<1x8x128xbf16>
    %70 = vector.shape_cast %69 : vector<1x8x128xbf16> to vector<8x128xbf16>
    %71 = vector.shape_cast %70 : vector<8x128xbf16> to vector<1x8x128xbf16>
    %72 = arith.extf %71 : vector<1x8x128xbf16> to vector<1x8x128xf32>
    %73 = vector.broadcast %62 : vector<1x1x128xf32> to vector<1x8x128xf32>
    %74 = arith.mulf %73, %72 : vector<1x8x128xf32>
    %75 = arith.addf %68, %74 : vector<1x8x128xf32>
    %c0_61 = arith.constant 0 : index
    %c0_62 = arith.constant 0 : index
    %c0_63 = arith.constant 0 : index
    %76 = vector.load %arg10[%c0_61, %c0_62, %c0_63] : memref<1x8x128xf32, #tpu.memory_space<vmem>>, vector<1x8x128xf32>
    %77 = arith.addf %76, %75 : vector<1x8x128xf32>
    %c0_64 = arith.constant 0 : index
    %c0_65 = arith.constant 0 : index
    %c0_66 = arith.constant 0 : index
    %78 = vector.load %arg10[%c0_64, %c0_65, %c0_66] : memref<1x8x128xf32, #tpu.memory_space<vmem>>, vector<1x8x128xf32>
    tpu.vector_store %arg10[%c0_64, %c0_65, %c0_66], %77 {strides = array<i32>} : memref<1x8x128xf32, #tpu.memory_space<vmem>>, vector<1x8x128xf32>,
    %c0_67 = arith.constant 0 : index
    %c0_68 = arith.constant 0 : index
    %c0_69 = arith.constant 0 : index
    %79 = vector.load %arg10[%c0_67, %c0_68, %c0_69] : memref<1x8x128xf32, #tpu.memory_space<vmem>>, vector<1x8x128xf32>
    %80 = vector.shape_cast %79 : vector<1x8x128xf32> to vector<8x128xf32>
    %81 = arith.truncf %80 : vector<8x128xf32> to vector<8x128xbf16>
    %c0_70 = arith.constant 0 : index
    %c0_71 = arith.constant 0 : index
    %82 = vector.load %arg6[%c0_70, %c0_71] : memref<128x16xbf16, #tpu.memory_space<vmem>>, vector<128x16xbf16>
    %cst_72 = arith.constant dense<0.000000e+00> : vector<8x16xf32>
    %83 = tpu.matmul %81, %82, %cst_72 {dimension_numbers = #tpu.dot_dimension_numbers<[1], [0], [0], [1], [0, 0, 1, 1], [], []>} : vector<8x128xbf16>, vector<128x16xbf16>, vector<8x16xf32> -> vector<8x16xf32>
    %84 = vector.shape_cast %83 : vector<8x16xf32> to vector<1x8x16xf32>
    %85 = arith.addf %84, %3 : vector<1x8x16xf32>
    %cst_73 = arith.constant dense<0.000000e+00> : vector<1x8xf32>
    %86 = vector.multi_reduction <add>, %85, %cst_73 [2] : vector<1x8x16xf32> to vector<1x8xf32>
    %cst_74 = arith.constant dense<0.000000e+00> : vector<8xf32>
    %87 = vector.multi_reduction <add>, %86, %cst_74 [0] : vector<1x8xf32> to vector<8xf32>
    %88 = vector.shape_cast %87 : vector<8xf32> to vector<1x8xf32>
    %89 = arith.mulf %85, %85 : vector<1x8x16xf32>
    %cst_75 = arith.constant dense<0.000000e+00> : vector<1x8xf32>
    %90 = vector.multi_reduction <add>, %89, %cst_75 [2] : vector<1x8x16xf32> to vector<1x8xf32>
    %cst_76 = arith.constant dense<0.000000e+00> : vector<8xf32>
    %91 = vector.multi_reduction <add>, %90, %cst_76 [0] : vector<1x8xf32> to vector<8xf32>
    %92 = vector.shape_cast %91 : vector<8xf32> to vector<1x8xf32>
    %93 = tpu.concatenate %88, %92 in 0 : vector<1x8xf32>, vector<1x8xf32> -> vector<2x8xf32>
    %94 = vector.shape_cast %93 : vector<2x8xf32> to vector<1x2x8xf32>
    %c0_77 = arith.constant 0 : index
    %c0_78 = arith.constant 0 : index
    %c0_79 = arith.constant 0 : index
    %95 = vector.load %arg8[%c0_77, %c0_78, %c0_79] : memref<1x2x8xf32, #tpu.memory_space<vmem>>, vector<1x2x8xf32>
    tpu.vector_store %arg8[%c0_77, %c0_78, %c0_79], %94 {strides = array<i32>} : memref<1x2x8xf32, #tpu.memory_space<vmem>>, vector<1x2x8xf32>,
    %96 = arith.truncf %85 : vector<1x8x16xf32> to vector<1x8x16xbf16>
    %c0_80 = arith.constant 0 : index
    %c0_81 = arith.constant 0 : index
    %c0_82 = arith.constant 0 : index
    %97 = vector.load %arg7[%c0_80, %c0_81, %c0_82] : memref<1x8x16xbf16, #tpu.memory_space<vmem>>, vector<1x8x16xbf16>
    tpu.vector_store %arg7[%c0_80, %c0_81, %c0_82], %96 {strides = array<i32>} : memref<1x8x16xbf16, #tpu.memory_space<vmem>>, vector<1x8x16xbf16>,
    return
  }
  func.func @transform_0(%arg0: i32) -> (i32, i32, i32) {
    %c0_i32 = arith.constant 0 : i32
    %c0_i32_0 = arith.constant 0 : i32
    %c0_i32_1 = arith.constant 0 : i32
    return %arg0, %c0_i32, %c0_i32_0 : i32, i32, i32
  }
  func.func @transform_1(%arg0: i32) -> (i32, i32) {
    %c0_i32 = arith.constant 0 : i32
    %c0_i32_0 = arith.constant 0 : i32
    %c0_i32_1 = arith.constant 0 : i32
    return %c0_i32, %c0_i32_0 : i32, i32
  }
  func.func @transform_2(%arg0: i32) -> (i32, i32, i32) {
    %c0_i32 = arith.constant 0 : i32
    %c0_i32_0 = arith.constant 0 : i32
    %c0_i32_1 = arith.constant 0 : i32
    %c0_i32_2 = arith.constant 0 : i32
    return %c0_i32, %c0_i32_0, %c0_i32_1 : i32, i32, i32
  }
  func.func @transform_3(%arg0: i32) -> (i32, i32, i32) {
    %c0_i32 = arith.constant 0 : i32
    %c0_i32_0 = arith.constant 0 : i32
    %c0_i32_1 = arith.constant 0 : i32
    %c0_i32_2 = arith.constant 0 : i32
    return %c0_i32, %c0_i32_0, %c0_i32_1 : i32, i32, i32
  }
  func.func @transform_4(%arg0: i32) -> (i32, i32) {
    %c0_i32 = arith.constant 0 : i32
    %c0_i32_0 = arith.constant 0 : i32
    %c0_i32_1 = arith.constant 0 : i32
    return %c0_i32, %c0_i32_0 : i32, i32
  }
  func.func @transform_5(%arg0: i32) -> (i32, i32) {
    %c0_i32 = arith.constant 0 : i32
    %c0_i32_0 = arith.constant 0 : i32
    %c0_i32_1 = arith.constant 0 : i32
    return %c0_i32, %c0_i32_0 : i32, i32
  }
  func.func @transform_6(%arg0: i32) -> (i32, i32, i32) {
    %c0_i32 = arith.constant 0 : i32
    %c0_i32_0 = arith.constant 0 : i32
    %c0_i32_1 = arith.constant 0 : i32
    return %arg0, %c0_i32, %c0_i32_0 : i32, i32, i32
  }
  func.func @transform_7(%arg0: i32) -> (i32, i32, i32) {
    %c0_i32 = arith.constant 0 : i32
    %c0_i32_0 = arith.constant 0 : i32
    %c0_i32_1 = arith.constant 0 : i32
    return %arg0, %c0_i32, %c0_i32_0 : i32, i32, i32
  }
}

</mosaic_0001>

<bundles_post_ra>
// kernel: tpu_custom_call.1
= control target key start
LH: loop header
LB: loop body
LE: loop exit
PB: predicated region body
PF: predicated region fallthrough
CT: control target
= control target key end

     0   :  { %13 = vsyncpa [#allocation5], 0  ;;  %s1031_s0 = inlined_call_operand.vmem [shape: bf16[2,4,16], index: 0, kind: input, shape index: {}]   ;;  %s1032_s1 = inlined_call_operand.vmem [shape: bf16[8,4], index: 1, kind: input, shape index: {}]   ;;  %s1033_s2 = inlined_call_operand.vmem [shape: bf16[4,8,128], index: 2, kind: input, shape index: {}]   ;;  %s1034_s3 = inlined_call_operand.vmem [shape: bf16[4,8,128], index: 3, kind: input, shape index: {}]   ;;  %s1035_s4 = inlined_call_operand.vmem [shape: bf16[16,128], index: 4, kind: input, shape index: {}]   ;;  %s1036_s5 = inlined_call_operand.vmem [shape: bf16[128,16], index: 5, kind: input, shape index: {}]   ;;  %s1037_s6 = inlined_call_operand.hbm [shape: bf16[2,8,16], index: 6, kind: output, shape index: {0}]   ;;  %s1038_s7 = inlined_call_operand.hbm [shape: f32[2,2,8], index: 7, kind: output, shape index: {1}]  }
   0x1   :  { %15 = vsyncpa [#allocation5 + $0x1], 0 }
   0x2   :  { %16 = vsyncpa [#allocation7], 0 }
   0x3   :  { %18 = vsyncpa [#allocation7 + $0x1], 0  ;;  %s881_s24 = smov 0   ;;  %s883_s25 = smov 0  }
   0x4   :  { %s885_s26 = smov 0   ;;  %s887_s27 = smov 0  }
   0x5 LB: > { %s902_s28 = sadd.s32 4294967295, %s838_s27   ;;  %s629_s29 = sadd.s32 4294967294, %s838_s27   ;;  %s838_s27 = sphi %s887_s27, %s1044_s27   ;;  %s834_s26 = sphi %s885_s26, %s1043_s26   ;;  %s830_s25 = sphi %s883_s25, %s1042_s25   ;;  %s826_s24 = sphi %s881_s24, %s1041_s24  }
   0x6   : > { %s906_s30 = sadd.s32 1, %s838_s27   ;;  %s162_s8 = sadd.s32 1, %s834_s26 }
   0x7   : > { %s159_s9 = ssub.s32 %s838_s27, %s906_s30  ;;  %p172_p0 = scmp.ne.s32.totalorder %s834_s26, %s830_s25 }
   0x8   : > { %p160_p1 = scmp.eq.s32.totalorder %s159_s9, 0  ;;  %p173_p2 = scmp.eq.s32.totalorder %s902_s28, 1 }
   0x9   : > { %p178_p3 = scmp.ne.s32.totalorder %s830_s25, %s826_s24  ;;  %p179_p4 = scmp.eq.s32.totalorder %s629_s29, 1 }
   0xa   : > { %s917_s10 = scalar_select %p160_p1, %s834_s26, %s162_s8  }
   0xb   : > { %p919_p5 = por %p173_p2, %p172_p0  ;;  %p923_p6 = por %p179_p4, %p178_p3 }
   0xc   : > { %p632_p7 = scmp.ge.s32.totalorder %s838_s27, 1  ;;  %p245_p8 = scmp.lt.s32.totalorder %s838_s27, 3 }
   0xe   : > { %p246_p9 = pnand %p632_p7, %p245_p8 }
   0xf   : > { %p281_p10 = scmp.lt.s32.totalorder (!%p246_p9), %s902_s28, 1  ;;  %s840_s9 = smov (!%p246_p9), 64  }
  0x10   : > { %249 = sbr.rel (%p246_p9) target bundleno = 562 (0x232), region = 44  ;;  %s682_s21 = sshll.u32 (!%p246_p9), %s902_s28, 2 }
  0x11   : > { %s518_s29 = scalar_lea.hbm (!%p246_p9), %s1037_s6, %s682_s21  ;;  %s764_s22 = scalar_lea.hbm (!%p246_p9), %s1037_s6, 8 }
  0x12   : > { %s522_s13 = sshll.u32 (!%p246_p9), %s518_s29, 4  ;;  %s523_s13 = int_to_ptr.hbm [resolvable:$true] %s522_s13 }
  0x15   : > { %v686_v0 = vld [vmem:[%s1035_s4] sm:$0xff]  ;;  %s282_s15 = scalar_select %p281_p10, %s902_s28, 1  ;;  %vm317_vm0 = vcmask 130048   ;;  %v694_v2 = vld [vmem:[%s1036_s5 + $0x38] sm:$0xff]  ;;  %v693_v3 = vld [vmem:[%s1036_s5 + $0x30] sm:$0xff]  ;;  %vm292_vm1 = vcmask 1041408  }
  0x16   : > { %327 = vmatpush.bf16.msra.mxu1 %v686_v0  ;;  %464 = vmatpush.bf16.msra.mxu2 %v694_v2  ;;  %v692_v4 = vld [vmem:[%s1036_s5 + $0x28] sm:$0xff]  ;;  %v691_v11 = vld [vmem:[%s1036_s5 + $0x20] sm:$0xff]  ;;  %v690_v12 = vld [vmem:[%s1036_s5 + $0x18] sm:$0xff]  ;;  %vm288_vm2 = vcmask 31744   ;;  %vm500_vm3 = vcmask 125952  }
  0x17   : > { %s635_s16 = sshll.u32 %s282_s15, 1  ;;  %v689_v13 = vld [vmem:[%s1036_s5 + $0x10] sm:$0xff]  ;;  %v688_v14 = vld [vmem:[%s1036_s5 + $0x8] sm:$0xff]  ;;  %v287_v16 = vld [vmem:[%s1032_s1] sm:$0xf]  ;;  %s758_s15 = sshra.s32 %s523_s13, 4  ;;  %s759_s15 = int_to_ptr.hbm [resolvable:$true] %s758_s15 }
  0x18   : > { %s284_s19 = scalar_lea.vmem %s1031_s0, %s635_s16  ;;  %v687_v17 = vld [vmem:[%s1036_s5] sm:$0xff]  ;;  %v645_v22 = vld [vmem:[%s1034_s3 + $0x8] sm:$0xff]   ;;  %s760_s16 = scalar_lea.hbm %s759_s15, 4 }
  0x19   : > { %v286_v1 = vld [vmem:[%s284_s19] sm:$0x3]  ;;  %v644_v23 = vld [vmem:[%s1033_s2 + $0x8] sm:$0xff]   ;;  %v374_v30 = vunpack.c.l.bf16 %v645_v22  ;;  %v391_v38 = vunpack.c.h.bf16 %v645_v22  ;;  %s978_s19 = sand.u32 1, %s830_s25   ;;  %p761_p11 = scmp.ne.s32.totalorder %s759_s15, %s760_s16 }
  0x1a   : > { %641 = vmatmul.msk.bf16.vlgmr.msra.gmra.mxu1 %vm317_vm0, %v286_v1  ;;  %465 = vmatpush.bf16.msra.mxu2 %v693_v3  ;;  %v294_v15 = vsel %vm292_vm1, %v286_v1, 0  ;;  %v341_v20 = vld [vmem:[%s1034_s3] sm:$0xff]   ;;  %v369_v33 = vunpack.c.l.bf16 %v644_v23  ;;  %v386_v41 = vunpack.c.h.bf16 %v644_v23  ;;  %s633_s20 = sshll.u32 %s978_s19, 2  ;;  %s503_s14 = scalar_lea.sflag [#allocation5], %s978_s19 }
  0x1b   : > { %303 = vmatpush.bf16.msra.mxu0 %v294_v15  ;;  %v337_v21 = vld [vmem:[%s1033_s2] sm:$0xff]   ;;  %v342_v24 = vunpack.c.l.bf16 %v341_v20  ;;  %v357_v32 = vunpack.c.h.bf16 %v341_v20  ;;  %s273_s8 = scalar_lea.vmem [#allocation4], %s633_s20  ;;  %p762_p12 = pnand %p761_p11, %p919_p5 }
  0x1c   : > { %v338_v26 = vunpack.c.l.bf16 %v337_v21  ;;  %v352_v28 = vunpack.c.h.bf16 %v337_v21  ;;  %p765_p0 = scmp.lt.s32.totalorder %s759_s15, %s1037_s6  ;;  %p766_p1 = scmp.lt.s32.totalorder %s764_s22, %s760_s16 }
  0x1d   : > { %p763_p13 = pneg %p762_p12 }
  0x1e   : > { %466 = vmatpush.bf16.msra.mxu2 %v692_v4  ;;  %636 = vmatmul.msk.bf16.vlgmr.msra.gmra.mxu0 %vm288_vm2, %v287_v16  ;;  %p767_p2 = por %p766_p1, %p765_p0 }
  0x20   : > { %p768_p3 = pnand %p767_p2, %p763_p13 }
  0x22   : > { %467 = vmatpush.bf16.msra.mxu2 %v691_v11 }
  0x26   : > { %468 = vmatpush.bf16.msra.mxu2 %v690_v12 }
  0x2a   : > { %469 = vmatpush.bf16.msra.mxu2 %v689_v13 }
  0x2e   : > { %470 = vmatpush.bf16.msra.mxu2 %v688_v14 }
  0x32   : > { %471 = vmatpush.bf16.msra.mxu2 %v687_v17 }
  0x97   : > { %v329_v5 = vpop.f32.mrf.mxu1 }
  0x98   : > { %333 = vst [vmem:[#allocation2] sm:$0xf] %v329_v5 }
  0x9b   : > { %v305_v58 = vpop.f32.mrf.mxu0 }
  0x9f   : > { %v331_v6 = vpop.f32.mrf.mxu1  ;;  %v364_v7 = vld [vmem:[#allocation2 + $0x2] sm:$0x1]  ;;  %v334_v8 = vld [vmem:[#allocation2] sm:$0x1]  ;;  %v381_v9 = vld [vmem:[#allocation2 + $0x3] sm:$0x1] }
  0xa0   : > { %365 = vrot.lane.b32.xlu1 %v364_v7, %s840_s9  ;;  %335 = vrot.lane.b32.xlu0 %v334_v8, %s840_s9  ;;  %v347_v10 = vld [vmem:[#allocation2 + $0x1] sm:$0x1]  ;;  %v741_v27 = vld [vmem:[#allocation2] ss:$0 sm:$0xff]  ;;  %v740_v36 = vld [vmem:[#allocation2 + $0x2] ss:$0 sm:$0xff] }
  0xa1   : > { %v743_v29 = vld [vmem:[#allocation2 + $0x1] ss:$0 sm:$0xff]  ;;  %v340_v42 = vmul.f32 %v741_v27, %v338_v26  ;;  %v742_v43 = vld [vmem:[#allocation2 + $0x3] ss:$0 sm:$0xff]  ;;  %v371_v47 = vmul.f32 %v740_v36, %v369_v33 }
  0xa2   : > { %v354_v44 = vmul.f32 %v743_v29, %v352_v28  ;;  %v388_v51 = vmul.f32 %v742_v43, %v386_v41 }
  0xa3   : > { %v307_v59 = vpop.f32.mrf.mxu0 }
  0xa8   : > { %382 = vrot.lane.b32.xlu1 %v381_v9, %s840_s9  ;;  %348 = vrot.lane.b32.xlu0 %v347_v10, %s840_s9  ;;  %s520_s9 = sshll.u32 %s273_s8, 4  ;;  %s521_s9 = int_to_ptr.vmem [resolvable:$true] %s520_s9 }
 0x112   : > { %v366_v18 = vpop.permute.xlu1 %365  ;;  %v336_v19 = vpop.permute.xlu0 %335 }
 0x113   : > { %v343_v25 = vperm.slane %v336_v19, 0  ;;  %v375_v31 = vperm.slane %v366_v18, 0 }
 0x115   : > { %v344_v37 = vmul.f32 %v343_v25, %v342_v24  ;;  %v376_v45 = vmul.f32 %v375_v31, %v374_v30 }
 0x117   : > { %v345_v48 = vadd.f32 %v344_v37, %v340_v42  ;;  %v377_v52 = vadd.f32 %v376_v45, %v371_v47 }
 0x11a   : > { %v383_v34 = vpop.permute.xlu1 %382  ;;  %v349_v35 = vpop.permute.xlu0 %348 }
 0x11b   : > { %v392_v39 = vperm.slane %v383_v34, 0  ;;  %v358_v40 = vperm.slane %v349_v35, 0 }
 0x11d   : > { %v359_v46 = vmul.f32 %v358_v40, %v357_v32  ;;  %v393_v49 = vmul.f32 %v392_v39, %v391_v38 }
 0x11f   : > { %v360_v50 = vadd.f32 %v359_v46, %v354_v44  ;;  %v394_v54 = vadd.f32 %v393_v49, %v388_v51 }
 0x121   : > { %v362_v53 = vadd.f32 %v360_v50, %v345_v48 }
 0x123   : > { %v379_v55 = vadd.f32 %v377_v52, %v362_v53 }
 0x125   : > { %v396_v56 = vadd.f32 %v394_v54, %v379_v55 }
 0x127   : > { %v399_v57 = vpack.c.bf16 %v396_v56, %v396_v56 }
 0x129   : > { %472 = vmatmul.bf16.vlgmr.msra.gmra.mxu2 %v399_v57 }
 0x1ac   : > { %v473_v60 = vpop.f32.mrf.mxu2 }
 0x1ad   : > { %v477_v61 = vadd.f32 %v473_v60, %v305_v58 }
 0x1af   : > { %v499_v62 = vpack.c.bf16 %v477_v61, %v477_v61  ;;  %v478_v63 = vsel %vm317_vm0, %v477_v61, 0.0 }
 0x1b0   : > { %479 = vadd.xlane.f32.xlu2 %v478_v63 }
 0x1b1   : > { %501 = vst.msk [vmem:[%s273_s8] sm:$0xf] %vm500_vm3, %v499_v62 }
 0x1b2   : > { %771 = shalt.err (!%p768_p3)
}
 0x1b3   : > { %695 = dma.vmem_to_hbm [thread:$0]  (%p919_p5), %s521_s9, 64, %s523_s13, %s503_s14   ;;  %v482_v0 = vmul.f32 %v477_v61, %v477_v61  ;;  %v488_v4 = vlaneseq  ;;  %vm495_vm4 = vcmask 1040384   ;;  %vm497_vm5 = vcmask 58368  }
 0x1b4   : > { %v475_v1 = vpop.f32.mrf.mxu2  ;;  %s634_s23 = sshll.u32 %s978_s19, 1  ;;  %s683_s29 = sshll.u32 %s902_s28, 1 }
 0x1b5   : > { %v483_v2 = vsel %vm317_vm0, %v482_v0, 0.0  ;;  %s532_s16 = scalar_lea.hbm %s1038_s7, %s683_s29  ;;  %v489_v5 = vand.u32 127, %v488_v4  ;;  %s280_s17 = scalar_lea.vmem [#allocation6], %s634_s23 }
 0x1b6   : > { %s534_s18 = sshll.u32 %s280_s17, 4  ;;  %s536_s22 = sshll.u32 %s532_s16, 4  ;;  %s535_s18 = int_to_ptr.vmem [resolvable:$true] %s534_s18  ;;  %s537_s22 = int_to_ptr.hbm [resolvable:$true] %s536_s22 }
 0x1b7   : > { %s508_s9 = scalar_lea.sflag [#allocation7], %s978_s19  ;;  %s786_s28 = sshra.s32 %s537_s22, 4  ;;  %s787_s28 = int_to_ptr.hbm [resolvable:$true] %s786_s28 }
 0x1b8   : > { %484 = vadd.xlane.f32.xlu2 %v483_v2  ;;  %s788_s13 = scalar_lea.hbm %s787_s28, 2  ;;  %s792_s20 = scalar_lea.hbm %s1038_s7, 4 }
 0x1b9   : > { %p789_p4 = scmp.ne.s32.totalorder %s787_s28, %s788_s13  ;;  %p793_p9 = scmp.lt.s32.totalorder %s787_s28, %s1038_s7 }
 0x1ba   : > { %p794_p10 = scmp.lt.s32.totalorder %s792_s20, %s788_s13 }
 0x1bb   : > { %p790_p7 = pnand %p789_p4, %p919_p5 }
 0x1bc   : > { %p795_p11 = por %p794_p10, %p793_p9 }
 0x1bd   : > { %p791_p8 = pneg %p790_p7 }
 0x1bf   : > { %p796_p12 = pnand %p795_p11, %p791_p8 }
 0x223   : > { %v480_v3 = vpop.xlane.xlu2 %479 }
 0x224   : > { %v490_v7 = vperm.slane %v480_v3, %v489_v5 }
 0x22b   : > { %v485_v6 = vpop.xlane.xlu2 %484 }
 0x22c   : > { %v493_v8 = vperm.slane %v485_v6, %v489_v5 }
 0x22e   : > { %v496_v9 = vsel %vm495_vm4, %v490_v7, %v493_v8 }
 0x22f   : > { %498 = vst.msk [vmem:[%s280_s17] sm:$0x3] %vm497_vm5, %v496_v9 }
 0x230   : > { %799 = shalt.err (!%p796_p12)
}
 0x231   : > { %696 = dma.vmem_to_hbm [thread:$0]  (%p919_p5), %s535_s18, 32, %s537_s22, %s508_s9  }
 0x232 PF: > { %p706_p13 = scmp.ge.s32.totalorder %s838_s27, 2  ;;  %s548_s19 = sand.u32 1, %s826_s24  }
 0x233   : > { %s549_s8 = scalar_lea.sflag [#allocation5], %s548_s19 }
 0x234   : > { %p700_p0 = pnand %p706_p13, %p923_p6 }
 0x236   : > { %p701_p1 = pneg %p700_p0 }
 0x238   : > { %817 = dma.done.wait (%p701_p1), %s549_s8, 64  }
 0x239   : > { %819 = vsyncadd (%p701_p1), %s549_s8, 4294967232  ;;  %s559_s15 = scalar_lea.sflag [#allocation7], %s548_s19 }
 0x23a   : > { %821 = dma.done.wait (%p701_p1), %s559_s15, 32  }
 0x23b   : > { %823 = vsyncadd (%p701_p1), %s559_s15, 4294967264  ;;  %p21_p5 = scmp.ge.s32.totalorder %s906_s30, 4   ;;  %s1041_s24 = smov %s830_s25 }
 0x23c   : > { %s1042_s25 = smov %s834_s26  ;;  %s1043_s26 = smov %s917_s10 }
 0x23d   : > { %s1044_s27 = smov %s906_s30  ;;  %23 = sbr.rel (!%p21_p5) target bundleno = 5 (0x5), region = 102 }
 0x242   :  { %565 = vsyncpa [#allocation5], 1 }
 0x243   :  { %567 = vsyncpa [#allocation5 + $0x1], 1 }
 0x244   :  { %568 = vsyncpa [#allocation7], 1 }
 0x245   :  { %570 = vsyncpa [#allocation7 + $0x1], 1 }

</bundles_post_ra>
